<compile_context>
chip_gen: v7x
topology: tpu7x:2x2x1
jax: 0.10.0
libtpu: 0.0.40
codegen_flags: <defaults>
</compile_context>

<pallas_src>
import functools

import jax
import jax.numpy as jnp
from jax.experimental import pallas as pl
from jax.experimental.pallas import tpu as pltpu

# ----- model hyper-parameters (small, consistent with the module) -----
NUM_STEPS = 8
BATCH = 8
NUM_INPUTS = 256
NUM_HIDDEN = 128
NUM_OUTPUTS = 10
BETA1 = 0.95
BETA2 = 0.95
THRESHOLD = 1.0

_LANE = 128  # pad output features to a lane-dense multiple of 128


def _snn_kernel(x_ref, w1_ref, b1_ref, w2_ref, b2_ref,
                spk_out_ref, mem_out_ref, spk1_ref,
                *, beta1, beta2, threshold, T, B, Nh, Np):
    """Full T-step LIF forward in one invocation, matmuls batched over T*B.

    x_ref:       [T*B, Nin] f32 (VMEM resident, pre-flattened)
    w1_ref:      [Nin, Nh]  f32
    b1_ref:      [1, Nh]    f32
    w2_ref:      [Nh, Np]   f32 (Np = Nout padded to 128)
    b2_ref:      [1, Np]    f32
    spk_out_ref: [T*B, Np]  f32 (spk2 record)
    mem_out_ref: [T*B, Np]  f32 (mem2 record)
    spk1_ref:    [T*B, Nh]  f32 VMEM scratch (hidden-layer spikes)
    """
    TB = T * B

    # ---- phase 1: one batched fc1 matmul (bias broadcast hoisted) ----
    b1 = jnp.broadcast_to(b1_ref[...], (TB, Nh))
    cur1_all = jnp.dot(x_ref[...], w1_ref[...],
                       preferred_element_type=jnp.float32) + b1

    # ---- phase 2: VPU-only mem1 recurrence (static per-step slices) ----
    mem1 = jnp.zeros((B, Nh), jnp.float32)  # init_leaky(): zero membrane
    for t in range(T):
        cur1 = cur1_all[t * B:(t + 1) * B, :]
        reset1 = (mem1 > threshold).astype(jnp.float32)
        mem1 = beta1 * mem1 + cur1 - reset1 * threshold
        spk1_ref[t * B:(t + 1) * B, :] = (mem1 > threshold).astype(jnp.float32)

    # ---- phase 3: one batched fc2 matmul ----
    b2 = jnp.broadcast_to(b2_ref[...], (TB, Np))
    cur2_all = jnp.dot(spk1_ref[...], w2_ref[...],
                       preferred_element_type=jnp.float32) + b2

    # ---- phase 4: VPU-only mem2 recurrence, lane-dense (128-wide) stores ----
    mem2 = jnp.zeros((B, Np), jnp.float32)
    for t in range(T):
        cur2 = cur2_all[t * B:(t + 1) * B, :]
        reset2 = (mem2 > threshold).astype(jnp.float32)
        mem2 = beta2 * mem2 + cur2 - reset2 * threshold
        spk_out_ref[t * B:(t + 1) * B, :] = (mem2 > threshold).astype(jnp.float32)
        mem_out_ref[t * B:(t + 1) * B, :] = mem2


def pad_output_params(w2, b2, lane=_LANE):
    """Pad fc2 weights/bias once (at init time) to a lane-dense width."""
    nout = w2.shape[1]
    np_ = max(lane, ((nout + lane - 1) // lane) * lane)
    pad = np_ - nout
    return jnp.pad(w2, ((0, 0), (0, pad))), jnp.pad(b2, ((0, 0), (0, pad)))


@functools.partial(jax.jit,
                   static_argnames=("num_outputs", "beta1", "beta2",
                                    "threshold"))
def snn_forward(x, w1, b1, w2p, b2p, *, num_outputs=NUM_OUTPUTS,
                beta1=BETA1, beta2=BETA2, threshold=THRESHOLD):
    """x: [T, B, Nin] f32 -> (spk2_rec, mem2_rec) each [T, B, num_outputs]."""
    T, B, Nin = x.shape
    Nh = w1.shape[1]
    Np = w2p.shape[1]

    # Layout-preserving flatten (last dim unchanged, B == f32 sublane count).
    x_flat = x.reshape(T * B, Nin)

    kernel = functools.partial(
        _snn_kernel, beta1=beta1, beta2=beta2, threshold=threshold,
        T=T, B=B, Nh=Nh, Np=Np)

    vmem = pl.BlockSpec(memory_space=pltpu.MemorySpace.VMEM)

    spk_out, mem_out = pl.pallas_call(
        kernel,
        out_shape=(jax.ShapeDtypeStruct((T * B, Np), jnp.float32),
                   jax.ShapeDtypeStruct((T * B, Np), jnp.float32)),
        in_specs=[vmem, vmem, vmem, vmem, vmem],
        out_specs=(vmem, vmem),
        scratch_shapes=[pltpu.VMEM((T * B, Nh), jnp.float32)],
    )(x_flat, w1, b1, w2p, b2p)

    # Drop zero-padded lanes and restore [T, B, Nout] (fused under jit).
    spk2_rec = spk_out[:, :num_outputs].reshape(T, B, num_outputs)
    mem2_rec = mem_out[:, :num_outputs].reshape(T, B, num_outputs)
    return spk2_rec, mem2_rec


def snn_forward_ref(x, w1, b1, w2, b2, *, beta1=BETA1, beta2=BETA2,
                    threshold=THRESHOLD):
    """Pure-JAX reference (lax.scan over time), matches the PyTorch forward."""
    B = x.shape[1]
    Nh = w1.shape[1]
    Nout = w2.shape[1]

    def step(carry, x_t):
        mem1, mem2 = carry
        cur1 = x_t @ w1 + b1
        reset1 = (mem1 > threshold).astype(jnp.float32)
        mem1 = beta1 * mem1 + cur1 - reset1 * threshold
        spk1 = (mem1 > threshold).astype(jnp.float32)
        cur2 = spk1 @ w2 + b2
        reset2 = (mem2 > threshold).astype(jnp.float32)
        mem2 = beta2 * mem2 + cur2 - reset2 * threshold
        spk2 = (mem2 > threshold).astype(jnp.float32)
        return (mem1, mem2), (spk2, mem2)

    init = (jnp.zeros((B, Nh), jnp.float32), jnp.zeros((B, Nout), jnp.float32))
    _, (spk2_rec, mem2_rec) = jax.lax.scan(step, init, x)
    return spk2_rec, mem2_rec


def init_params(key):
    """Deterministic PyTorch-Linear-style init (uniform +/- 1/sqrt(fan_in))."""
    k1, k2, k3, k4 = jax.random.split(key, 4)
    bound1 = 1.0 / (NUM_INPUTS ** 0.5)
    bound2 = 1.0 / (NUM_HIDDEN ** 0.5)
    w1 = jax.random.uniform(k1, (NUM_INPUTS, NUM_HIDDEN), jnp.float32,
                            -bound1, bound1)
    b1 = jax.random.uniform(k2, (1, NUM_HIDDEN), jnp.float32, -bound1, bound1)
    w2 = jax.random.uniform(k3, (NUM_HIDDEN, NUM_OUTPUTS), jnp.float32,
                            -bound2, bound2)
    b2 = jax.random.uniform(k4, (1, NUM_OUTPUTS), jnp.float32, -bound2, bound2)
    return w1, b1, w2, b2


if __name__ == "__main__":
    key = jax.random.PRNGKey(0)
    kx, kp = jax.random.split(key)
    x = jax.random.uniform(kx, (NUM_STEPS, BATCH, NUM_INPUTS), jnp.float32)
    w1, b1, w2, b2 = init_params(kp)

    # Pad fc2 params once (hoisted out of the forward pass).
    w2p, b2p = pad_output_params(w2, b2)

    spk2, mem2 = jax.block_until_ready(
        snn_forward(x, w1, b1, w2p, b2p, num_outputs=NUM_OUTPUTS))
    spk2_ref, mem2_ref = snn_forward_ref(x, w1, b1, w2, b2)

    assert spk2.shape == (NUM_STEPS, BATCH, NUM_OUTPUTS)
    assert mem2.shape == (NUM_STEPS, BATCH, NUM_OUTPUTS)
    assert jnp.allclose(mem2, mem2_ref, atol=1e-5)
    assert jnp.allclose(spk2, spk2_ref, atol=1e-5)

    print("KERNEL_OK")
</pallas_src>

<mosaic_0001>
module attributes {stable_mosaic.version = 11 : i64} {
  func.func @_snn_kernel(%arg0: memref<64x256xf32, #tpu.memory_space<vmem>>, %arg1: memref<256x128xf32, #tpu.memory_space<vmem>>, %arg2: memref<1x128xf32, #tpu.memory_space<vmem>>, %arg3: memref<128x128xf32, #tpu.memory_space<vmem>>, %arg4: memref<1x128xf32, #tpu.memory_space<vmem>>, %arg5: memref<64x128xf32, #tpu.memory_space<vmem>>, %arg6: memref<64x128xf32, #tpu.memory_space<vmem>>, %arg7: memref<64x128xf32, #tpu.memory_space<vmem>>) attributes {dimension_semantics = [], scalar_prefetch = 0 : i64, scratch_operands = 1 : i64, tpu.core_type = #tpu.core_type<tc>} {
    %c0 = arith.constant 0 : index
    %c0_0 = arith.constant 0 : index
    %0 = vector.load %arg2[%c0, %c0_0] : memref<1x128xf32, #tpu.memory_space<vmem>>, vector<1x128xf32>
    %1 = vector.shape_cast %0 : vector<1x128xf32> to vector<1x128xf32>
    %2 = vector.broadcast %1 : vector<1x128xf32> to vector<64x128xf32>
    %c0_1 = arith.constant 0 : index
    %c0_2 = arith.constant 0 : index
    %3 = vector.load %arg0[%c0_1, %c0_2] : memref<64x256xf32, #tpu.memory_space<vmem>>, vector<64x256xf32>
    %c0_3 = arith.constant 0 : index
    %c0_4 = arith.constant 0 : index
    %4 = vector.load %arg1[%c0_3, %c0_4] : memref<256x128xf32, #tpu.memory_space<vmem>>, vector<256x128xf32>
    %cst = arith.constant dense<0.000000e+00> : vector<64x128xf32>
    %5 = tpu.matmul %3, %4, %cst {dimension_numbers = #tpu.dot_dimension_numbers<[1], [0], [0], [1], [0, 0, 1, 1], [], []>} : vector<64x256xf32>, vector<256x128xf32>, vector<64x128xf32> -> vector<64x128xf32>
    %6 = arith.addf %5, %2 : vector<64x128xf32>
    %cst_5 = arith.constant 0.000000e+00 : f32
    %7 = vector.broadcast %cst_5 : f32 to vector<8x128xf32>
    %8 = vector.extract_strided_slice %6 {offsets = [0, 0], sizes = [8, 128], strides = [1, 1]} : vector<64x128xf32> to vector<8x128xf32>
    %cst_6 = arith.constant 1.000000e+00 : f32
    %9 = vector.broadcast %cst_6 : f32 to vector<8x128xf32>
    %10 = arith.cmpf ogt, %7, %9 : vector<8x128xf32>
    %11 = arith.extui %10 : vector<8x128xi1> to vector<8x128xi32>
    %12 = arith.sitofp %11 : vector<8x128xi32> to vector<8x128xf32>
    %cst_7 = arith.constant 0.949999988 : f32
    %13 = vector.broadcast %cst_7 : f32 to vector<8x128xf32>
    %14 = arith.mulf %13, %7 : vector<8x128xf32>
    %15 = arith.addf %14, %8 : vector<8x128xf32>
    %cst_8 = arith.constant 1.000000e+00 : f32
    %16 = vector.broadcast %cst_8 : f32 to vector<8x128xf32>
    %17 = arith.mulf %12, %16 : vector<8x128xf32>
    %18 = arith.subf %15, %17 : vector<8x128xf32>
    %cst_9 = arith.constant 1.000000e+00 : f32
    %19 = vector.broadcast %cst_9 : f32 to vector<8x128xf32>
    %20 = arith.cmpf ogt, %18, %19 : vector<8x128xf32>
    %21 = arith.extui %20 : vector<8x128xi1> to vector<8x128xi32>
    %22 = arith.sitofp %21 : vector<8x128xi32> to vector<8x128xf32>
    %c0_10 = arith.constant 0 : index
    %c0_11 = arith.constant 0 : index
    %23 = vector.load %arg7[%c0_10, %c0_11] : memref<64x128xf32, #tpu.memory_space<vmem>>, vector<8x128xf32>
    tpu.vector_store %arg7[%c0_10, %c0_11], %22 {strides = array<i32>} : memref<64x128xf32, #tpu.memory_space<vmem>>, vector<8x128xf32>,
    %24 = vector.extract_strided_slice %6 {offsets = [8, 0], sizes = [8, 128], strides = [1, 1]} : vector<64x128xf32> to vector<8x128xf32>
    %cst_12 = arith.constant 1.000000e+00 : f32
    %25 = vector.broadcast %cst_12 : f32 to vector<8x128xf32>
    %26 = arith.cmpf ogt, %18, %25 : vector<8x128xf32>
    %27 = arith.extui %26 : vector<8x128xi1> to vector<8x128xi32>
    %28 = arith.sitofp %27 : vector<8x128xi32> to vector<8x128xf32>
    %cst_13 = arith.constant 0.949999988 : f32
    %29 = vector.broadcast %cst_13 : f32 to vector<8x128xf32>
    %30 = arith.mulf %29, %18 : vector<8x128xf32>
    %31 = arith.addf %30, %24 : vector<8x128xf32>
    %cst_14 = arith.constant 1.000000e+00 : f32
    %32 = vector.broadcast %cst_14 : f32 to vector<8x128xf32>
    %33 = arith.mulf %28, %32 : vector<8x128xf32>
    %34 = arith.subf %31, %33 : vector<8x128xf32>
    %cst_15 = arith.constant 1.000000e+00 : f32
    %35 = vector.broadcast %cst_15 : f32 to vector<8x128xf32>
    %36 = arith.cmpf ogt, %34, %35 : vector<8x128xf32>
    %37 = arith.extui %36 : vector<8x128xi1> to vector<8x128xi32>
    %38 = arith.sitofp %37 : vector<8x128xi32> to vector<8x128xf32>
    %c8 = arith.constant 8 : index
    %c0_16 = arith.constant 0 : index
    %39 = vector.load %arg7[%c8, %c0_16] : memref<64x128xf32, #tpu.memory_space<vmem>>, vector<8x128xf32>
    tpu.vector_store %arg7[%c8, %c0_16], %38 {strides = array<i32>} : memref<64x128xf32, #tpu.memory_space<vmem>>, vector<8x128xf32>,
    %40 = vector.extract_strided_slice %6 {offsets = [16, 0], sizes = [8, 128], strides = [1, 1]} : vector<64x128xf32> to vector<8x128xf32>
    %cst_17 = arith.constant 1.000000e+00 : f32
    %41 = vector.broadcast %cst_17 : f32 to vector<8x128xf32>
    %42 = arith.cmpf ogt, %34, %41 : vector<8x128xf32>
    %43 = arith.extui %42 : vector<8x128xi1> to vector<8x128xi32>
    %44 = arith.sitofp %43 : vector<8x128xi32> to vector<8x128xf32>
    %cst_18 = arith.constant 0.949999988 : f32
    %45 = vector.broadcast %cst_18 : f32 to vector<8x128xf32>
    %46 = arith.mulf %45, %34 : vector<8x128xf32>
    %47 = arith.addf %46, %40 : vector<8x128xf32>
    %cst_19 = arith.constant 1.000000e+00 : f32
    %48 = vector.broadcast %cst_19 : f32 to vector<8x128xf32>
    %49 = arith.mulf %44, %48 : vector<8x128xf32>
    %50 = arith.subf %47, %49 : vector<8x128xf32>
    %cst_20 = arith.constant 1.000000e+00 : f32
    %51 = vector.broadcast %cst_20 : f32 to vector<8x128xf32>
    %52 = arith.cmpf ogt, %50, %51 : vector<8x128xf32>
    %53 = arith.extui %52 : vector<8x128xi1> to vector<8x128xi32>
    %54 = arith.sitofp %53 : vector<8x128xi32> to vector<8x128xf32>
    %c16 = arith.constant 16 : index
    %c0_21 = arith.constant 0 : index
    %55 = vector.load %arg7[%c16, %c0_21] : memref<64x128xf32, #tpu.memory_space<vmem>>, vector<8x128xf32>
    tpu.vector_store %arg7[%c16, %c0_21], %54 {strides = array<i32>} : memref<64x128xf32, #tpu.memory_space<vmem>>, vector<8x128xf32>,
    %56 = vector.extract_strided_slice %6 {offsets = [24, 0], sizes = [8, 128], strides = [1, 1]} : vector<64x128xf32> to vector<8x128xf32>
    %cst_22 = arith.constant 1.000000e+00 : f32
    %57 = vector.broadcast %cst_22 : f32 to vector<8x128xf32>
    %58 = arith.cmpf ogt, %50, %57 : vector<8x128xf32>
    %59 = arith.extui %58 : vector<8x128xi1> to vector<8x128xi32>
    %60 = arith.sitofp %59 : vector<8x128xi32> to vector<8x128xf32>
    %cst_23 = arith.constant 0.949999988 : f32
    %61 = vector.broadcast %cst_23 : f32 to vector<8x128xf32>
    %62 = arith.mulf %61, %50 : vector<8x128xf32>
    %63 = arith.addf %62, %56 : vector<8x128xf32>
    %cst_24 = arith.constant 1.000000e+00 : f32
    %64 = vector.broadcast %cst_24 : f32 to vector<8x128xf32>
    %65 = arith.mulf %60, %64 : vector<8x128xf32>
    %66 = arith.subf %63, %65 : vector<8x128xf32>
    %cst_25 = arith.constant 1.000000e+00 : f32
    %67 = vector.broadcast %cst_25 : f32 to vector<8x128xf32>
    %68 = arith.cmpf ogt, %66, %67 : vector<8x128xf32>
    %69 = arith.extui %68 : vector<8x128xi1> to vector<8x128xi32>
    %70 = arith.sitofp %69 : vector<8x128xi32> to vector<8x128xf32>
    %c24 = arith.constant 24 : index
    %c0_26 = arith.constant 0 : index
    %71 = vector.load %arg7[%c24, %c0_26] : memref<64x128xf32, #tpu.memory_space<vmem>>, vector<8x128xf32>
    tpu.vector_store %arg7[%c24, %c0_26], %70 {strides = array<i32>} : memref<64x128xf32, #tpu.memory_space<vmem>>, vector<8x128xf32>,
    %72 = vector.extract_strided_slice %6 {offsets = [32, 0], sizes = [8, 128], strides = [1, 1]} : vector<64x128xf32> to vector<8x128xf32>
    %cst_27 = arith.constant 1.000000e+00 : f32
    %73 = vector.broadcast %cst_27 : f32 to vector<8x128xf32>
    %74 = arith.cmpf ogt, %66, %73 : vector<8x128xf32>
    %75 = arith.extui %74 : vector<8x128xi1> to vector<8x128xi32>
    %76 = arith.sitofp %75 : vector<8x128xi32> to vector<8x128xf32>
    %cst_28 = arith.constant 0.949999988 : f32
    %77 = vector.broadcast %cst_28 : f32 to vector<8x128xf32>
    %78 = arith.mulf %77, %66 : vector<8x128xf32>
    %79 = arith.addf %78, %72 : vector<8x128xf32>
    %cst_29 = arith.constant 1.000000e+00 : f32
    %80 = vector.broadcast %cst_29 : f32 to vector<8x128xf32>
    %81 = arith.mulf %76, %80 : vector<8x128xf32>
    %82 = arith.subf %79, %81 : vector<8x128xf32>
    %cst_30 = arith.constant 1.000000e+00 : f32
    %83 = vector.broadcast %cst_30 : f32 to vector<8x128xf32>
    %84 = arith.cmpf ogt, %82, %83 : vector<8x128xf32>
    %85 = arith.extui %84 : vector<8x128xi1> to vector<8x128xi32>
    %86 = arith.sitofp %85 : vector<8x128xi32> to vector<8x128xf32>
    %c32 = arith.constant 32 : index
    %c0_31 = arith.constant 0 : index
    %87 = vector.load %arg7[%c32, %c0_31] : memref<64x128xf32, #tpu.memory_space<vmem>>, vector<8x128xf32>
    tpu.vector_store %arg7[%c32, %c0_31], %86 {strides = array<i32>} : memref<64x128xf32, #tpu.memory_space<vmem>>, vector<8x128xf32>,
    %88 = vector.extract_strided_slice %6 {offsets = [40, 0], sizes = [8, 128], strides = [1, 1]} : vector<64x128xf32> to vector<8x128xf32>
    %cst_32 = arith.constant 1.000000e+00 : f32
    %89 = vector.broadcast %cst_32 : f32 to vector<8x128xf32>
    %90 = arith.cmpf ogt, %82, %89 : vector<8x128xf32>
    %91 = arith.extui %90 : vector<8x128xi1> to vector<8x128xi32>
    %92 = arith.sitofp %91 : vector<8x128xi32> to vector<8x128xf32>
    %cst_33 = arith.constant 0.949999988 : f32
    %93 = vector.broadcast %cst_33 : f32 to vector<8x128xf32>
    %94 = arith.mulf %93, %82 : vector<8x128xf32>
    %95 = arith.addf %94, %88 : vector<8x128xf32>
    %cst_34 = arith.constant 1.000000e+00 : f32
    %96 = vector.broadcast %cst_34 : f32 to vector<8x128xf32>
    %97 = arith.mulf %92, %96 : vector<8x128xf32>
    %98 = arith.subf %95, %97 : vector<8x128xf32>
    %cst_35 = arith.constant 1.000000e+00 : f32
    %99 = vector.broadcast %cst_35 : f32 to vector<8x128xf32>
    %100 = arith.cmpf ogt, %98, %99 : vector<8x128xf32>
    %101 = arith.extui %100 : vector<8x128xi1> to vector<8x128xi32>
    %102 = arith.sitofp %101 : vector<8x128xi32> to vector<8x128xf32>
    %c40 = arith.constant 40 : index
    %c0_36 = arith.constant 0 : index
    %103 = vector.load %arg7[%c40, %c0_36] : memref<64x128xf32, #tpu.memory_space<vmem>>, vector<8x128xf32>
    tpu.vector_store %arg7[%c40, %c0_36], %102 {strides = array<i32>} : memref<64x128xf32, #tpu.memory_space<vmem>>, vector<8x128xf32>,
    %104 = vector.extract_strided_slice %6 {offsets = [48, 0], sizes = [8, 128], strides = [1, 1]} : vector<64x128xf32> to vector<8x128xf32>
    %cst_37 = arith.constant 1.000000e+00 : f32
    %105 = vector.broadcast %cst_37 : f32 to vector<8x128xf32>
    %106 = arith.cmpf ogt, %98, %105 : vector<8x128xf32>
    %107 = arith.extui %106 : vector<8x128xi1> to vector<8x128xi32>
    %108 = arith.sitofp %107 : vector<8x128xi32> to vector<8x128xf32>
    %cst_38 = arith.constant 0.949999988 : f32
    %109 = vector.broadcast %cst_38 : f32 to vector<8x128xf32>
    %110 = arith.mulf %109, %98 : vector<8x128xf32>
    %111 = arith.addf %110, %104 : vector<8x128xf32>
    %cst_39 = arith.constant 1.000000e+00 : f32
    %112 = vector.broadcast %cst_39 : f32 to vector<8x128xf32>
    %113 = arith.mulf %108, %112 : vector<8x128xf32>
    %114 = arith.subf %111, %113 : vector<8x128xf32>
    %cst_40 = arith.constant 1.000000e+00 : f32
    %115 = vector.broadcast %cst_40 : f32 to vector<8x128xf32>
    %116 = arith.cmpf ogt, %114, %115 : vector<8x128xf32>
    %117 = arith.extui %116 : vector<8x128xi1> to vector<8x128xi32>
    %118 = arith.sitofp %117 : vector<8x128xi32> to vector<8x128xf32>
    %c48 = arith.constant 48 : index
    %c0_41 = arith.constant 0 : index
    %119 = vector.load %arg7[%c48, %c0_41] : memref<64x128xf32, #tpu.memory_space<vmem>>, vector<8x128xf32>
    tpu.vector_store %arg7[%c48, %c0_41], %118 {strides = array<i32>} : memref<64x128xf32, #tpu.memory_space<vmem>>, vector<8x128xf32>,
    %120 = vector.extract_strided_slice %6 {offsets = [56, 0], sizes = [8, 128], strides = [1, 1]} : vector<64x128xf32> to vector<8x128xf32>
    %cst_42 = arith.constant 1.000000e+00 : f32
    %121 = vector.broadcast %cst_42 : f32 to vector<8x128xf32>
    %122 = arith.cmpf ogt, %114, %121 : vector<8x128xf32>
    %123 = arith.extui %122 : vector<8x128xi1> to vector<8x128xi32>
    %124 = arith.sitofp %123 : vector<8x128xi32> to vector<8x128xf32>
    %cst_43 = arith.constant 0.949999988 : f32
    %125 = vector.broadcast %cst_43 : f32 to vector<8x128xf32>
    %126 = arith.mulf %125, %114 : vector<8x128xf32>
    %127 = arith.addf %126, %120 : vector<8x128xf32>
    %cst_44 = arith.constant 1.000000e+00 : f32
    %128 = vector.broadcast %cst_44 : f32 to vector<8x128xf32>
    %129 = arith.mulf %124, %128 : vector<8x128xf32>
    %130 = arith.subf %127, %129 : vector<8x128xf32>
    %cst_45 = arith.constant 1.000000e+00 : f32
    %131 = vector.broadcast %cst_45 : f32 to vector<8x128xf32>
    %132 = arith.cmpf ogt, %130, %131 : vector<8x128xf32>
    %133 = arith.extui %132 : vector<8x128xi1> to vector<8x128xi32>
    %134 = arith.sitofp %133 : vector<8x128xi32> to vector<8x128xf32>
    %c56 = arith.constant 56 : index
    %c0_46 = arith.constant 0 : index
    %135 = vector.load %arg7[%c56, %c0_46] : memref<64x128xf32, #tpu.memory_space<vmem>>, vector<8x128xf32>
    tpu.vector_store %arg7[%c56, %c0_46], %134 {strides = array<i32>} : memref<64x128xf32, #tpu.memory_space<vmem>>, vector<8x128xf32>,
    %c0_47 = arith.constant 0 : index
    %c0_48 = arith.constant 0 : index
    %136 = vector.load %arg4[%c0_47, %c0_48] : memref<1x128xf32, #tpu.memory_space<vmem>>, vector<1x128xf32>
    %137 = vector.shape_cast %136 : vector<1x128xf32> to vector<1x128xf32>
    %138 = vector.broadcast %137 : vector<1x128xf32> to vector<64x128xf32>
    %c0_49 = arith.constant 0 : index
    %c0_50 = arith.constant 0 : index
    %139 = vector.load %arg7[%c0_49, %c0_50] : memref<64x128xf32, #tpu.memory_space<vmem>>, vector<64x128xf32>
    %c0_51 = arith.constant 0 : index
    %c0_52 = arith.constant 0 : index
    %140 = vector.load %arg3[%c0_51, %c0_52] : memref<128x128xf32, #tpu.memory_space<vmem>>, vector<128x128xf32>
    %cst_53 = arith.constant dense<0.000000e+00> : vector<64x128xf32>
    %141 = tpu.matmul %139, %140, %cst_53 {dimension_numbers = #tpu.dot_dimension_numbers<[1], [0], [0], [1], [0, 0, 1, 1], [], []>} : vector<64x128xf32>, vector<128x128xf32>, vector<64x128xf32> -> vector<64x128xf32>
    %142 = arith.addf %141, %138 : vector<64x128xf32>
    %cst_54 = arith.constant 0.000000e+00 : f32
    %143 = vector.broadcast %cst_54 : f32 to vector<8x128xf32>
    %144 = vector.extract_strided_slice %142 {offsets = [0, 0], sizes = [8, 128], strides = [1, 1]} : vector<64x128xf32> to vector<8x128xf32>
    %cst_55 = arith.constant 1.000000e+00 : f32
    %145 = vector.broadcast %cst_55 : f32 to vector<8x128xf32>
    %146 = arith.cmpf ogt, %143, %145 : vector<8x128xf32>
    %147 = arith.extui %146 : vector<8x128xi1> to vector<8x128xi32>
    %148 = arith.sitofp %147 : vector<8x128xi32> to vector<8x128xf32>
    %cst_56 = arith.constant 0.949999988 : f32
    %149 = vector.broadcast %cst_56 : f32 to vector<8x128xf32>
    %150 = arith.mulf %149, %143 : vector<8x128xf32>
    %151 = arith.addf %150, %144 : vector<8x128xf32>
    %cst_57 = arith.constant 1.000000e+00 : f32
    %152 = vector.broadcast %cst_57 : f32 to vector<8x128xf32>
    %153 = arith.mulf %148, %152 : vector<8x128xf32>
    %154 = arith.subf %151, %153 : vector<8x128xf32>
    %cst_58 = arith.constant 1.000000e+00 : f32
    %155 = vector.broadcast %cst_58 : f32 to vector<8x128xf32>
    %156 = arith.cmpf ogt, %154, %155 : vector<8x128xf32>
    %157 = arith.extui %156 : vector<8x128xi1> to vector<8x128xi32>
    %158 = arith.sitofp %157 : vector<8x128xi32> to vector<8x128xf32>
    %c0_59 = arith.constant 0 : index
    %c0_60 = arith.constant 0 : index
    %159 = vector.load %arg5[%c0_59, %c0_60] : memref<64x128xf32, #tpu.memory_space<vmem>>, vector<8x128xf32>
    tpu.vector_store %arg5[%c0_59, %c0_60], %158 {strides = array<i32>} : memref<64x128xf32, #tpu.memory_space<vmem>>, vector<8x128xf32>,
    %c0_61 = arith.constant 0 : index
    %c0_62 = arith.constant 0 : index
    %160 = vector.load %arg6[%c0_61, %c0_62] : memref<64x128xf32, #tpu.memory_space<vmem>>, vector<8x128xf32>
    tpu.vector_store %arg6[%c0_61, %c0_62], %154 {strides = array<i32>} : memref<64x128xf32, #tpu.memory_space<vmem>>, vector<8x128xf32>,
    %161 = vector.extract_strided_slice %142 {offsets = [8, 0], sizes = [8, 128], strides = [1, 1]} : vector<64x128xf32> to vector<8x128xf32>
    %cst_63 = arith.constant 1.000000e+00 : f32
    %162 = vector.broadcast %cst_63 : f32 to vector<8x128xf32>
    %163 = arith.cmpf ogt, %154, %162 : vector<8x128xf32>
    %164 = arith.extui %163 : vector<8x128xi1> to vector<8x128xi32>
    %165 = arith.sitofp %164 : vector<8x128xi32> to vector<8x128xf32>
    %cst_64 = arith.constant 0.949999988 : f32
    %166 = vector.broadcast %cst_64 : f32 to vector<8x128xf32>
    %167 = arith.mulf %166, %154 : vector<8x128xf32>
    %168 = arith.addf %167, %161 : vector<8x128xf32>
    %cst_65 = arith.constant 1.000000e+00 : f32
    %169 = vector.broadcast %cst_65 : f32 to vector<8x128xf32>
    %170 = arith.mulf %165, %169 : vector<8x128xf32>
    %171 = arith.subf %168, %170 : vector<8x128xf32>
    %cst_66 = arith.constant 1.000000e+00 : f32
    %172 = vector.broadcast %cst_66 : f32 to vector<8x128xf32>
    %173 = arith.cmpf ogt, %171, %172 : vector<8x128xf32>
    %174 = arith.extui %173 : vector<8x128xi1> to vector<8x128xi32>
    %175 = arith.sitofp %174 : vector<8x128xi32> to vector<8x128xf32>
    %c8_67 = arith.constant 8 : index
    %c0_68 = arith.constant 0 : index
    %176 = vector.load %arg5[%c8_67, %c0_68] : memref<64x128xf32, #tpu.memory_space<vmem>>, vector<8x128xf32>
    tpu.vector_store %arg5[%c8_67, %c0_68], %175 {strides = array<i32>} : memref<64x128xf32, #tpu.memory_space<vmem>>, vector<8x128xf32>,
    %c8_69 = arith.constant 8 : index
    %c0_70 = arith.constant 0 : index
    %177 = vector.load %arg6[%c8_69, %c0_70] : memref<64x128xf32, #tpu.memory_space<vmem>>, vector<8x128xf32>
    tpu.vector_store %arg6[%c8_69, %c0_70], %171 {strides = array<i32>} : memref<64x128xf32, #tpu.memory_space<vmem>>, vector<8x128xf32>,
    %178 = vector.extract_strided_slice %142 {offsets = [16, 0], sizes = [8, 128], strides = [1, 1]} : vector<64x128xf32> to vector<8x128xf32>
    %cst_71 = arith.constant 1.000000e+00 : f32
    %179 = vector.broadcast %cst_71 : f32 to vector<8x128xf32>
    %180 = arith.cmpf ogt, %171, %179 : vector<8x128xf32>
    %181 = arith.extui %180 : vector<8x128xi1> to vector<8x128xi32>
    %182 = arith.sitofp %181 : vector<8x128xi32> to vector<8x128xf32>
    %cst_72 = arith.constant 0.949999988 : f32
    %183 = vector.broadcast %cst_72 : f32 to vector<8x128xf32>
    %184 = arith.mulf %183, %171 : vector<8x128xf32>
    %185 = arith.addf %184, %178 : vector<8x128xf32>
    %cst_73 = arith.constant 1.000000e+00 : f32
    %186 = vector.broadcast %cst_73 : f32 to vector<8x128xf32>
    %187 = arith.mulf %182, %186 : vector<8x128xf32>
    %188 = arith.subf %185, %187 : vector<8x128xf32>
    %cst_74 = arith.constant 1.000000e+00 : f32
    %189 = vector.broadcast %cst_74 : f32 to vector<8x128xf32>
    %190 = arith.cmpf ogt, %188, %189 : vector<8x128xf32>
    %191 = arith.extui %190 : vector<8x128xi1> to vector<8x128xi32>
    %192 = arith.sitofp %191 : vector<8x128xi32> to vector<8x128xf32>
    %c16_75 = arith.constant 16 : index
    %c0_76 = arith.constant 0 : index
    %193 = vector.load %arg5[%c16_75, %c0_76] : memref<64x128xf32, #tpu.memory_space<vmem>>, vector<8x128xf32>
    tpu.vector_store %arg5[%c16_75, %c0_76], %192 {strides = array<i32>} : memref<64x128xf32, #tpu.memory_space<vmem>>, vector<8x128xf32>,
    %c16_77 = arith.constant 16 : index
    %c0_78 = arith.constant 0 : index
    %194 = vector.load %arg6[%c16_77, %c0_78] : memref<64x128xf32, #tpu.memory_space<vmem>>, vector<8x128xf32>
    tpu.vector_store %arg6[%c16_77, %c0_78], %188 {strides = array<i32>} : memref<64x128xf32, #tpu.memory_space<vmem>>, vector<8x128xf32>,
    %195 = vector.extract_strided_slice %142 {offsets = [24, 0], sizes = [8, 128], strides = [1, 1]} : vector<64x128xf32> to vector<8x128xf32>
    %cst_79 = arith.constant 1.000000e+00 : f32
    %196 = vector.broadcast %cst_79 : f32 to vector<8x128xf32>
    %197 = arith.cmpf ogt, %188, %196 : vector<8x128xf32>
    %198 = arith.extui %197 : vector<8x128xi1> to vector<8x128xi32>
    %199 = arith.sitofp %198 : vector<8x128xi32> to vector<8x128xf32>
    %cst_80 = arith.constant 0.949999988 : f32
    %200 = vector.broadcast %cst_80 : f32 to vector<8x128xf32>
    %201 = arith.mulf %200, %188 : vector<8x128xf32>
    %202 = arith.addf %201, %195 : vector<8x128xf32>
    %cst_81 = arith.constant 1.000000e+00 : f32
    %203 = vector.broadcast %cst_81 : f32 to vector<8x128xf32>
    %204 = arith.mulf %199, %203 : vector<8x128xf32>
    %205 = arith.subf %202, %204 : vector<8x128xf32>
    %cst_82 = arith.constant 1.000000e+00 : f32
    %206 = vector.broadcast %cst_82 : f32 to vector<8x128xf32>
    %207 = arith.cmpf ogt, %205, %206 : vector<8x128xf32>
    %208 = arith.extui %207 : vector<8x128xi1> to vector<8x128xi32>
    %209 = arith.sitofp %208 : vector<8x128xi32> to vector<8x128xf32>
    %c24_83 = arith.constant 24 : index
    %c0_84 = arith.constant 0 : index
    %210 = vector.load %arg5[%c24_83, %c0_84] : memref<64x128xf32, #tpu.memory_space<vmem>>, vector<8x128xf32>
    tpu.vector_store %arg5[%c24_83, %c0_84], %209 {strides = array<i32>} : memref<64x128xf32, #tpu.memory_space<vmem>>, vector<8x128xf32>,
    %c24_85 = arith.constant 24 : index
    %c0_86 = arith.constant 0 : index
    %211 = vector.load %arg6[%c24_85, %c0_86] : memref<64x128xf32, #tpu.memory_space<vmem>>, vector<8x128xf32>
    tpu.vector_store %arg6[%c24_85, %c0_86], %205 {strides = array<i32>} : memref<64x128xf32, #tpu.memory_space<vmem>>, vector<8x128xf32>,
    %212 = vector.extract_strided_slice %142 {offsets = [32, 0], sizes = [8, 128], strides = [1, 1]} : vector<64x128xf32> to vector<8x128xf32>
    %cst_87 = arith.constant 1.000000e+00 : f32
    %213 = vector.broadcast %cst_87 : f32 to vector<8x128xf32>
    %214 = arith.cmpf ogt, %205, %213 : vector<8x128xf32>
    %215 = arith.extui %214 : vector<8x128xi1> to vector<8x128xi32>
    %216 = arith.sitofp %215 : vector<8x128xi32> to vector<8x128xf32>
    %cst_88 = arith.constant 0.949999988 : f32
    %217 = vector.broadcast %cst_88 : f32 to vector<8x128xf32>
    %218 = arith.mulf %217, %205 : vector<8x128xf32>
    %219 = arith.addf %218, %212 : vector<8x128xf32>
    %cst_89 = arith.constant 1.000000e+00 : f32
    %220 = vector.broadcast %cst_89 : f32 to vector<8x128xf32>
    %221 = arith.mulf %216, %220 : vector<8x128xf32>
    %222 = arith.subf %219, %221 : vector<8x128xf32>
    %cst_90 = arith.constant 1.000000e+00 : f32
    %223 = vector.broadcast %cst_90 : f32 to vector<8x128xf32>
    %224 = arith.cmpf ogt, %222, %223 : vector<8x128xf32>
    %225 = arith.extui %224 : vector<8x128xi1> to vector<8x128xi32>
    %226 = arith.sitofp %225 : vector<8x128xi32> to vector<8x128xf32>
    %c32_91 = arith.constant 32 : index
    %c0_92 = arith.constant 0 : index
    %227 = vector.load %arg5[%c32_91, %c0_92] : memref<64x128xf32, #tpu.memory_space<vmem>>, vector<8x128xf32>
    tpu.vector_store %arg5[%c32_91, %c0_92], %226 {strides = array<i32>} : memref<64x128xf32, #tpu.memory_space<vmem>>, vector<8x128xf32>,
    %c32_93 = arith.constant 32 : index
    %c0_94 = arith.constant 0 : index
    %228 = vector.load %arg6[%c32_93, %c0_94] : memref<64x128xf32, #tpu.memory_space<vmem>>, vector<8x128xf32>
    tpu.vector_store %arg6[%c32_93, %c0_94], %222 {strides = array<i32>} : memref<64x128xf32, #tpu.memory_space<vmem>>, vector<8x128xf32>,
    %229 = vector.extract_strided_slice %142 {offsets = [40, 0], sizes = [8, 128], strides = [1, 1]} : vector<64x128xf32> to vector<8x128xf32>
    %cst_95 = arith.constant 1.000000e+00 : f32
    %230 = vector.broadcast %cst_95 : f32 to vector<8x128xf32>
    %231 = arith.cmpf ogt, %222, %230 : vector<8x128xf32>
    %232 = arith.extui %231 : vector<8x128xi1> to vector<8x128xi32>
    %233 = arith.sitofp %232 : vector<8x128xi32> to vector<8x128xf32>
    %cst_96 = arith.constant 0.949999988 : f32
    %234 = vector.broadcast %cst_96 : f32 to vector<8x128xf32>
    %235 = arith.mulf %234, %222 : vector<8x128xf32>
    %236 = arith.addf %235, %229 : vector<8x128xf32>
    %cst_97 = arith.constant 1.000000e+00 : f32
    %237 = vector.broadcast %cst_97 : f32 to vector<8x128xf32>
    %238 = arith.mulf %233, %237 : vector<8x128xf32>
    %239 = arith.subf %236, %238 : vector<8x128xf32>
    %cst_98 = arith.constant 1.000000e+00 : f32
    %240 = vector.broadcast %cst_98 : f32 to vector<8x128xf32>
    %241 = arith.cmpf ogt, %239, %240 : vector<8x128xf32>
    %242 = arith.extui %241 : vector<8x128xi1> to vector<8x128xi32>
    %243 = arith.sitofp %242 : vector<8x128xi32> to vector<8x128xf32>
    %c40_99 = arith.constant 40 : index
    %c0_100 = arith.constant 0 : index
    %244 = vector.load %arg5[%c40_99, %c0_100] : memref<64x128xf32, #tpu.memory_space<vmem>>, vector<8x128xf32>
    tpu.vector_store %arg5[%c40_99, %c0_100], %243 {strides = array<i32>} : memref<64x128xf32, #tpu.memory_space<vmem>>, vector<8x128xf32>,
    %c40_101 = arith.constant 40 : index
    %c0_102 = arith.constant 0 : index
    %245 = vector.load %arg6[%c40_101, %c0_102] : memref<64x128xf32, #tpu.memory_space<vmem>>, vector<8x128xf32>
    tpu.vector_store %arg6[%c40_101, %c0_102], %239 {strides = array<i32>} : memref<64x128xf32, #tpu.memory_space<vmem>>, vector<8x128xf32>,
    %246 = vector.extract_strided_slice %142 {offsets = [48, 0], sizes = [8, 128], strides = [1, 1]} : vector<64x128xf32> to vector<8x128xf32>
    %cst_103 = arith.constant 1.000000e+00 : f32
    %247 = vector.broadcast %cst_103 : f32 to vector<8x128xf32>
    %248 = arith.cmpf ogt, %239, %247 : vector<8x128xf32>
    %249 = arith.extui %248 : vector<8x128xi1> to vector<8x128xi32>
    %250 = arith.sitofp %249 : vector<8x128xi32> to vector<8x128xf32>
    %cst_104 = arith.constant 0.949999988 : f32
    %251 = vector.broadcast %cst_104 : f32 to vector<8x128xf32>
    %252 = arith.mulf %251, %239 : vector<8x128xf32>
    %253 = arith.addf %252, %246 : vector<8x128xf32>
    %cst_105 = arith.constant 1.000000e+00 : f32
    %254 = vector.broadcast %cst_105 : f32 to vector<8x128xf32>
    %255 = arith.mulf %250, %254 : vector<8x128xf32>
    %256 = arith.subf %253, %255 : vector<8x128xf32>
    %cst_106 = arith.constant 1.000000e+00 : f32
    %257 = vector.broadcast %cst_106 : f32 to vector<8x128xf32>
    %258 = arith.cmpf ogt, %256, %257 : vector<8x128xf32>
    %259 = arith.extui %258 : vector<8x128xi1> to vector<8x128xi32>
    %260 = arith.sitofp %259 : vector<8x128xi32> to vector<8x128xf32>
    %c48_107 = arith.constant 48 : index
    %c0_108 = arith.constant 0 : index
    %261 = vector.load %arg5[%c48_107, %c0_108] : memref<64x128xf32, #tpu.memory_space<vmem>>, vector<8x128xf32>
    tpu.vector_store %arg5[%c48_107, %c0_108], %260 {strides = array<i32>} : memref<64x128xf32, #tpu.memory_space<vmem>>, vector<8x128xf32>,
    %c48_109 = arith.constant 48 : index
    %c0_110 = arith.constant 0 : index
    %262 = vector.load %arg6[%c48_109, %c0_110] : memref<64x128xf32, #tpu.memory_space<vmem>>, vector<8x128xf32>
    tpu.vector_store %arg6[%c48_109, %c0_110], %256 {strides = array<i32>} : memref<64x128xf32, #tpu.memory_space<vmem>>, vector<8x128xf32>,
    %263 = vector.extract_strided_slice %142 {offsets = [56, 0], sizes = [8, 128], strides = [1, 1]} : vector<64x128xf32> to vector<8x128xf32>
    %cst_111 = arith.constant 1.000000e+00 : f32
    %264 = vector.broadcast %cst_111 : f32 to vector<8x128xf32>
    %265 = arith.cmpf ogt, %256, %264 : vector<8x128xf32>
    %266 = arith.extui %265 : vector<8x128xi1> to vector<8x128xi32>
    %267 = arith.sitofp %266 : vector<8x128xi32> to vector<8x128xf32>
    %cst_112 = arith.constant 0.949999988 : f32
    %268 = vector.broadcast %cst_112 : f32 to vector<8x128xf32>
    %269 = arith.mulf %268, %256 : vector<8x128xf32>
    %270 = arith.addf %269, %263 : vector<8x128xf32>
    %cst_113 = arith.constant 1.000000e+00 : f32
    %271 = vector.broadcast %cst_113 : f32 to vector<8x128xf32>
    %272 = arith.mulf %267, %271 : vector<8x128xf32>
    %273 = arith.subf %270, %272 : vector<8x128xf32>
    %cst_114 = arith.constant 1.000000e+00 : f32
    %274 = vector.broadcast %cst_114 : f32 to vector<8x128xf32>
    %275 = arith.cmpf ogt, %273, %274 : vector<8x128xf32>
    %276 = arith.extui %275 : vector<8x128xi1> to vector<8x128xi32>
    %277 = arith.sitofp %276 : vector<8x128xi32> to vector<8x128xf32>
    %c56_115 = arith.constant 56 : index
    %c0_116 = arith.constant 0 : index
    %278 = vector.load %arg5[%c56_115, %c0_116] : memref<64x128xf32, #tpu.memory_space<vmem>>, vector<8x128xf32>
    tpu.vector_store %arg5[%c56_115, %c0_116], %277 {strides = array<i32>} : memref<64x128xf32, #tpu.memory_space<vmem>>, vector<8x128xf32>,
    %c56_117 = arith.constant 56 : index
    %c0_118 = arith.constant 0 : index
    %279 = vector.load %arg6[%c56_117, %c0_118] : memref<64x128xf32, #tpu.memory_space<vmem>>, vector<8x128xf32>
    tpu.vector_store %arg6[%c56_117, %c0_118], %273 {strides = array<i32>} : memref<64x128xf32, #tpu.memory_space<vmem>>, vector<8x128xf32>,
    return
  }
}

</mosaic_0001>

<bundles_post_ra>
// kernel: snn_forward.1
= control target key start
LH: loop header
LB: loop body
LE: loop exit
PB: predicated region body
PF: predicated region fallthrough
CT: control target
= control target key end

     0   :  { %12 = vsyncpa [#allocation4], 0  ;;  %s956_s0 = inlined_call_operand.hbm [shape: f32[64,256], index: 0, kind: input, shape index: {}]   ;;  %s957_s1 = inlined_call_operand.hbm [shape: f32[256,128], index: 1, kind: input, shape index: {}]   ;;  %s958_s2 = inlined_call_operand.vmem [shape: f32[1,128], index: 2, kind: input, shape index: {}]   ;;  %s959_s3 = inlined_call_operand.hbm [shape: f32[128,128], index: 3, kind: input, shape index: {}]   ;;  %s960_s4 = inlined_call_operand.vmem [shape: f32[1,128], index: 4, kind: input, shape index: {}]   ;;  %s961_s5 = inlined_call_operand.vmem [shape: f32[64,128], index: 5, kind: output, shape index: {0}]   ;;  %s962_s6 = inlined_call_operand.vmem [shape: f32[64,128], index: 6, kind: output, shape index: {1}]  }
   0x1   :  { %13 = vsyncpa [#allocation6], 0  ;;  %s783_s21 = smov [#allocation5]   ;;  %s713_s25 = scalar_lea.hbm %s957_s1, 4096 }
   0x2   :  { %s31_s22 = sshll.u32 %s783_s21, 4  ;;  %p714_p0 = scmp.ne.s32.totalorder %s957_s1, %s713_s25  ;;  %s32_s22 = int_to_ptr.vmem [resolvable:$true] %s31_s22 }
   0x3   :  { %p717_p1 = scmp.lt.u32.totalorder %s713_s25, %s957_s1 }
   0x5   :  { %p719_p2 = pnand %p717_p1, %p714_p0 }
   0x7   :  { %722 = shalt.err (!%p719_p2)
}
   0x8   :  { %s723_s30 = scalar_lea.vmem %s32_s22, 4096  ;;  %p728_p4 = scmp.lt.s32.totalorder %s32_s22, %s32_s22 }
   0x9   :  { %p724_p3 = scmp.ne.s32.totalorder %s32_s22, %s723_s30  ;;  %p729_p5 = scmp.lt.s32.totalorder %s723_s30, %s723_s30 }
   0xb   :  { %p730_p6 = por %p729_p5, %p728_p4 }
   0xd   :  { %p731_p7 = pnand %p730_p6, %p724_p3 }
   0xf   :  { %734 = shalt.err (!%p731_p7)
}
  0x10   :  { %s784_s7 = smov 128   ;;  %s785_s8 = smov 8  }
  0x11   :  { %37 = dma.hbm_to_vmem [thread:$0]  %s957_s1, 4096, %s32_s22, [#allocation6], %s784_s7, %s784_s7, %s785_s8  }
  0x12   :  { %s786_s11 = smov [#allocation3]   ;;  %s735_s15 = scalar_lea.hbm %s956_s0, 2048 }
  0x13   :  { %s19_s12 = sshll.u32 %s786_s11, 4  ;;  %p736_p8 = scmp.ne.s32.totalorder %s956_s0, %s735_s15  ;;  %s20_s12 = int_to_ptr.vmem [resolvable:$true] %s19_s12 }
  0x14   :  { %p739_p9 = scmp.lt.u32.totalorder %s735_s15, %s956_s0 }
  0x16   :  { %p741_p10 = pnand %p739_p9, %p736_p8 }
  0x18   :  { %744 = shalt.err (!%p741_p10)
}
  0x19   :  { %s745_s20 = scalar_lea.vmem %s20_s12, 2048  ;;  %p750_p12 = scmp.lt.s32.totalorder %s20_s12, %s20_s12 }
  0x1a   :  { %p746_p11 = scmp.ne.s32.totalorder %s20_s12, %s745_s20  ;;  %p751_p13 = scmp.lt.s32.totalorder %s745_s20, %s745_s20 }
  0x1c   :  { %p752_p0 = por %p751_p13, %p750_p12 }
  0x1e   :  { %p753_p1 = pnand %p752_p0, %p746_p11 }
  0x20   :  { %756 = shalt.err (!%p753_p1)
}
  0x21   :  { %s787_s1 = smov 256   ;;  %s788_s21 = smov 16  }
  0x22   :  { %25 = dma.hbm_to_vmem [thread:$0]  %s956_s0, 2048, %s20_s12, [#allocation4], %s787_s1, %s787_s1, %s788_s21  }
  0x23   :  { %s789_s24 = smov [#allocation7]   ;;  %s757_s28 = scalar_lea.hbm %s959_s3, 2048 }
  0x24   :  { %s45_s25 = sshll.u32 %s789_s24, 4  ;;  %p758_p2 = scmp.ne.s32.totalorder %s959_s3, %s757_s28  ;;  %s46_s25 = int_to_ptr.vmem [resolvable:$true] %s45_s25 }
  0x25   :  { %p761_p3 = scmp.lt.u32.totalorder %s757_s28, %s959_s3 }
  0x27   :  { %p763_p4 = pnand %p761_p3, %p758_p2 }
  0x29   :  { %766 = shalt.err (!%p763_p4)
}
  0x2a   :  { %s767_s11 = scalar_lea.vmem %s46_s25, 2048  ;;  %p772_p6 = scmp.lt.s32.totalorder %s46_s25, %s46_s25 }
  0x2b   :  { %p768_p5 = scmp.ne.s32.totalorder %s46_s25, %s767_s11  ;;  %p773_p7 = scmp.lt.s32.totalorder %s767_s11, %s767_s11 }
  0x2d   :  { %p774_p8 = por %p773_p7, %p772_p6 }
  0x2f   :  { %p775_p9 = pnand %p774_p8, %p768_p5 }
  0x31   :  { %778 = shalt.err (!%p775_p9)
}
  0x32   :  { %51 = dma.hbm_to_vmem [thread:$0]  %s959_s3, 2048, %s46_s25, [#allocation6], %s784_s7, %s784_s7, %s785_s8  }
  0x33   :  { %779 = dma.done.wait [#allocation4], 2048  }
  0x34   :  { %780 = vsyncadd [#allocation4], 4294965248 }
  0x35   :  { %781 = dma.done.wait [#allocation6], 6144  }
  0x36   :  { %782 = vsyncadd [#allocation6], 4294961152  ;;  %v102_v0 = vld [vmem:[#allocation5 + $0x80] sm:$0xff]  ;;  %v103_v1 = vld [vmem:[#allocation5 + $0x88] sm:$0xff] }
  0x37   :  { %v86_v2 = vld [vmem:[#allocation5] sm:$0xff]  ;;  %v640_v3 = vpack.c.bf16 %v103_v1, %v102_v0  ;;  %v87_v4 = vld [vmem:[#allocation5 + $0x8] sm:$0xff]  ;;  %v104_v5 = vld [vmem:[#allocation5 + $0x90] sm:$0xff] }
  0x38   :  { %v105_v6 = vld [vmem:[#allocation5 + $0x98] sm:$0xff]  ;;  %v642_v7 = vpack.c.bf16 %v87_v4, %v86_v2  ;;  %v88_v9 = vld [vmem:[#allocation5 + $0x10] sm:$0xff]  ;;  %v106_v11 = vld [vmem:[#allocation5 + $0xa0] sm:$0xff] }
  0x39   :  { %v644_v8 = vpack.c.bf16 %v105_v6, %v104_v5  ;;  %v89_v10 = vld [vmem:[#allocation5 + $0x18] sm:$0xff]  ;;  %641 = vmatprep.subr.bf16.mxu0 %v640_v3  ;;  %v107_v12 = vld [vmem:[#allocation5 + $0xa8] sm:$0xff]  ;;  %v90_v15 = vld [vmem:[#allocation5 + $0x20] sm:$0xff] }
  0x3a   :  { %643 = vmatpush3.bf16.msra.mxu0 %v642_v7  ;;  %v646_v13 = vpack.c.bf16 %v89_v10, %v88_v9  ;;  %v648_v14 = vpack.c.bf16 %v107_v12, %v106_v11  ;;  %v91_v16 = vld [vmem:[#allocation5 + $0x28] sm:$0xff]  ;;  %v108_v17 = vld [vmem:[#allocation5 + $0xb0] sm:$0xff]  ;;  %v109_v18 = vld [vmem:[#allocation5 + $0xb8] sm:$0xff] }
  0x3b   :  { %645 = vmatprep.subr.bf16.mxu0 %v644_v8  ;;  %v650_v19 = vpack.c.bf16 %v91_v16, %v90_v15  ;;  %v652_v20 = vpack.c.bf16 %v109_v18, %v108_v17  ;;  %v92_v21 = vld [vmem:[#allocation5 + $0x30] sm:$0xff]  ;;  %v93_v22 = vld [vmem:[#allocation5 + $0x38] sm:$0xff]  ;;  %v110_v23 = vld [vmem:[#allocation5 + $0xc0] sm:$0xff] }
  0x3c   :  { %v111_v24 = vld [vmem:[#allocation5 + $0xc8] sm:$0xff]  ;;  %v654_v26 = vpack.c.bf16 %v93_v22, %v92_v21  ;;  %v94_v28 = vld [vmem:[#allocation5 + $0x40] sm:$0xff]  ;;  %v112_v30 = vld [vmem:[#allocation5 + $0xd0] sm:$0xff] }
  0x3d   :  { %v71_v25 = vld [vmem:[#allocation3 + $0x8] sm:$0xff]  ;;  %v656_v27 = vpack.c.bf16 %v111_v24, %v110_v23  ;;  %v113_v31 = vld [vmem:[#allocation5 + $0xd8] sm:$0xff]  ;;  %v96_v32 = vld [vmem:[#allocation5 + $0x50] sm:$0xff] }
  0x3e   :  { %647 = vmatpush3.bf16.msra.mxu0 %v646_v13  ;;  %182 = vmatprep.mubr.f32.mxu0 %v71_v25  ;;  %v95_v29 = vld [vmem:[#allocation5 + $0x48] sm:$0xff]  ;;  %v296_v34 = vld [vmem:[#allocation7] sm:$0xff]  ;;  %v298_v36 = vld [vmem:[#allocation7 + $0x10] sm:$0xff]  ;;  %v660_v37 = vpack.c.bf16 %v113_v31, %v112_v30 }
  0x3f   :  { %649 = vmatprep.subr.bf16.mxu0 %v648_v14  ;;  %v658_v33 = vpack.c.bf16 %v95_v29, %v94_v28  ;;  %v297_v35 = vld [vmem:[#allocation7 + $0x8] sm:$0xff]  ;;  %v97_v38 = vld [vmem:[#allocation5 + $0x58] sm:$0xff]  ;;  %v114_v39 = vld [vmem:[#allocation5 + $0xe0] sm:$0xff] }
  0x40   :  { %v672_v40 = vpack.c.bf16 %v297_v35, %v296_v34  ;;  %v299_v41 = vld [vmem:[#allocation7 + $0x18] sm:$0xff]  ;;  %v115_v42 = vld [vmem:[#allocation5 + $0xe8] sm:$0xff]  ;;  %v300_v44 = vld [vmem:[#allocation7 + $0x20] sm:$0xff]  ;;  %v662_v46 = vpack.c.bf16 %v97_v38, %v96_v32  ;;  %v790_v32 = vmov 1.0  }
  0x41   :  { %v676_v43 = vpack.c.bf16 %v299_v41, %v298_v36  ;;  %v301_v45 = vld [vmem:[#allocation7 + $0x28] sm:$0xff]  ;;  %v664_v47 = vpack.c.bf16 %v115_v42, %v114_v39  ;;  %v98_v48 = vld [vmem:[#allocation5 + $0x60] sm:$0xff]  ;;  %v116_v50 = vld [vmem:[#allocation5 + $0xf0] sm:$0xff]  ;;  %v791_v39 = vmov 0.0  }
  0x42   :  { %651 = vmatpush3.bf16.msra.mxu0 %v650_v19  ;;  %673 = vmatprep.subr.bf16.mxu1 %v672_v40  ;;  %v99_v49 = vld [vmem:[#allocation5 + $0x68] sm:$0xff]  ;;  %v680_v51 = vpack.c.bf16 %v301_v45, %v300_v44  ;;  %v117_v52 = vld [vmem:[#allocation5 + $0xf8] sm:$0xff]  ;;  %v302_v53 = vld [vmem:[#allocation7 + $0x30] sm:$0xff] }
  0x43   :  { %653 = vmatprep.subr.bf16.mxu0 %v652_v20  ;;  %675 = vmatpush3.bf16.msra.mxu1 %v672_v40  ;;  %v303_v54 = vld [vmem:[#allocation7 + $0x38] sm:$0xff]  ;;  %v666_v55 = vpack.c.bf16 %v99_v49, %v98_v48  ;;  %v668_v56 = vpack.c.bf16 %v117_v52, %v116_v50  ;;  %v100_v57 = vld [vmem:[#allocation5 + $0x70] sm:$0xff]  ;;  %v304_v60 = vld [vmem:[#allocation7 + $0x40] sm:$0xff] }
  0x44   :  { %677 = vmatprep.subr.bf16.mxu1 %v676_v43  ;;  %v101_v58 = vld [vmem:[#allocation5 + $0x78] sm:$0xff]  ;;  %v684_v59 = vpack.c.bf16 %v303_v54, %v302_v53  ;;  %v305_v61 = vld [vmem:[#allocation7 + $0x48] sm:$0xff]  ;;  %v70_v0 = vld [vmem:[#allocation3] sm:$0xff] }
  0x45   :  { %v670_v62 = vpack.c.bf16 %v101_v58, %v100_v57  ;;  %v688_v63 = vpack.c.bf16 %v305_v61, %v304_v60  ;;  %v73_v1 = vld [vmem:[#allocation3 + $0x18] sm:$0xff]  ;;  %v72_v2 = vld [vmem:[#allocation3 + $0x10] sm:$0xff]  ;;  %v75_v3 = vld [vmem:[#allocation3 + $0x28] sm:$0xff] }
  0x46   :  { %655 = vmatpush3.bf16.msra.mxu0 %v654_v26  ;;  %v74_v4 = vld [vmem:[#allocation3 + $0x20] sm:$0xff]  ;;  %v77_v5 = vld [vmem:[#allocation3 + $0x38] sm:$0xff]  ;;  %v76_v6 = vld [vmem:[#allocation3 + $0x30] sm:$0xff] }
  0x47   :  { %657 = vmatprep.subr.bf16.mxu0 %v656_v27  ;;  %679 = vmatpush3.bf16.msra.mxu1 %v676_v43  ;;  %v79_v7 = vld [vmem:[#allocation3 + $0x48] sm:$0xff]  ;;  %v78_v8 = vld [vmem:[#allocation3 + $0x40] sm:$0xff]  ;;  %v81_v9 = vld [vmem:[#allocation3 + $0x58] sm:$0xff] }
  0x48   :  { %681 = vmatprep.subr.bf16.mxu1 %v680_v51  ;;  %v80_v10 = vld [vmem:[#allocation3 + $0x50] sm:$0xff]  ;;  %v83_v11 = vld [vmem:[#allocation3 + $0x68] sm:$0xff]  ;;  %v82_v12 = vld [vmem:[#allocation3 + $0x60] sm:$0xff] }
  0x49   :  { %v85_v13 = vld [vmem:[#allocation3 + $0x78] sm:$0xff]  ;;  %v84_v14 = vld [vmem:[#allocation3 + $0x70] sm:$0xff]  ;;  %v308_v18 = vld [vmem:[#allocation7 + $0x60] sm:$0xff] }
  0x4a   :  { %659 = vmatpush3.bf16.msra.mxu0 %v658_v33  ;;  %v306_v15 = vld [vmem:[#allocation7 + $0x50] sm:$0xff]  ;;  %v307_v16 = vld [vmem:[#allocation7 + $0x58] sm:$0xff]  ;;  %v309_v19 = vld [vmem:[#allocation7 + $0x68] sm:$0xff] }
  0x4b   :  { %661 = vmatprep.subr.bf16.mxu0 %v660_v37  ;;  %683 = vmatpush3.bf16.msra.mxu1 %v680_v51  ;;  %v692_v17 = vpack.c.bf16 %v307_v16, %v306_v15  ;;  %v696_v20 = vpack.c.bf16 %v309_v19, %v308_v18  ;;  %v310_v21 = vld [vmem:[#allocation7 + $0x70] sm:$0xff]  ;;  %v311_v22 = vld [vmem:[#allocation7 + $0x78] sm:$0xff]  ;;  %v872_v26 = vld [vmem:[%s958_s2] ss:$0 sm:$0xff] }
  0x4c   :  { %685 = vmatprep.subr.bf16.mxu1 %v684_v59  ;;  %v700_v23 = vpack.c.bf16 %v311_v22, %v310_v21 }
  0x4e   :  { %663 = vmatpush3.bf16.msra.mxu0 %v662_v46 }
  0x4f   :  { %665 = vmatprep.subr.bf16.mxu0 %v664_v47  ;;  %687 = vmatpush3.bf16.msra.mxu1 %v684_v59 }
  0x50   :  { %689 = vmatprep.subr.bf16.mxu1 %v688_v63 }
  0x52   :  { %667 = vmatpush3.bf16.msra.mxu0 %v666_v55 }
  0x53   :  { %669 = vmatprep.subr.bf16.mxu0 %v668_v56  ;;  %691 = vmatpush3.bf16.msra.mxu1 %v688_v63 }
  0x54   :  { %693 = vmatprep.subr.bf16.mxu1 %v692_v17 }
  0x56   :  { %671 = vmatpush3.bf16.msra.mxu0 %v670_v62 }
  0x57   :  { %695 = vmatpush3.bf16.msra.mxu1 %v692_v17 }
  0x58   :  { %697 = vmatprep.subr.bf16.mxu1 %v696_v20 }
  0x59   :  { %183 = vmatmul.mubr.f32.vlgmr.msra.gmra.mrb[0].mxu0 %v70_v0 }
  0x5a   :  { %187 = vmatprep.mubr.f32.mxu0 %v73_v1 }
  0x5b   :  { %699 = vmatpush3.bf16.msra.mxu1 %v696_v20 }
  0x5c   :  { %701 = vmatprep.subr.bf16.mxu1 %v700_v23 }
  0x5d   :  { %188 = vmatmul.mubr.f32.gmra.mrb[2].mxu0 %v72_v2 }
  0x5e   :  { %192 = vmatprep.mubr.f32.mxu0 %v75_v3 }
  0x5f   :  { %703 = vmatpush3.bf16.msra.mxu1 %v700_v23  ;;  %v499_v23 = vld [vmem:[%s960_s4] ss:$0 sm:$0xff] }
  0x61   :  { %193 = vmatmul.mubr.f32.gmra.mrb[4].mxu0 %v74_v4 }
  0x62   :  { %197 = vmatprep.mubr.f32.mxu0 %v77_v5 }
  0x65   :  { %198 = vmatmul.mubr.f32.gmra.mrb[6].mxu0 %v76_v6 }
  0x66   :  { %202 = vmatprep.mubr.f32.mxu0 %v79_v7 }
  0x69   :  { %203 = vmatmul.mubr.f32.gmra.mrb[8].mxu0 %v78_v8 }
  0x6a   :  { %207 = vmatprep.mubr.f32.mxu0 %v81_v9 }
  0x6d   :  { %208 = vmatmul.mubr.f32.gmra.mrb[10].mxu0 %v80_v10 }
  0x6e   :  { %212 = vmatprep.mubr.f32.mxu0 %v83_v11 }
  0x71   :  { %213 = vmatmul.mubr.f32.gmra.mrb[12].mxu0 %v82_v12 }
  0x72   :  { %217 = vmatprep.mubr.f32.mxu0 %v85_v13 }
  0x75   :  { %218 = vmatmul.mubr.f32.gmra.mrb[14].mxu0 %v84_v14 }
 0x12c   :  { %v548_v24 = vpop.f32.mrb[0].mxu0 }
 0x12d   :  { %v549_v25 = vpop.f32.mrb[1].mxu0 }
 0x12e   :  { %v550_v27 = vadd.f32 %v549_v25, %v548_v24 }
 0x130   :  { %v551_v28 = vpop.f32.mrb[2].mxu0  ;;  %v185_v29 = vadd.f32 %v550_v27, %v872_v26 }
 0x131   :  { %v552_v30 = vpop.f32.mrb[3].mxu0 }
 0x132   :  { %v553_v31 = vadd.f32 %v552_v30, %v551_v28  ;;  %vm228_vm0 = vcmp.gt.f32.partialorder %v185_v29, 1.0  ;;  %v232_v34 = vmul.f32 0.95, %v185_v29 }
 0x133   :  { %628 = vmatprep.mubr.msk.f32.mxu1 %vm228_vm0, %v790_v32  ;;  %v491_v40 = vsel %vm228_vm0, 1.0, %v791_v39 }
 0x134   :  { %v190_v33 = vadd.f32 %v553_v31, %v872_v26  ;;  %v554_v35 = vpop.f32.mrb[4].mxu0 }
 0x135   :  { %v555_v36 = vpop.f32.mrb[5].mxu0 }
 0x136   :  { %v233_v37 = vadd.f32 %v232_v34, %v190_v33  ;;  %v556_v38 = vadd.f32 %v555_v36, %v554_v35 }
 0x138   :  { %v234_v41 = vsub.f32 %v233_v37, %v491_v40  ;;  %v195_v42 = vadd.f32 %v556_v38, %v872_v26  ;;  %v557_v43 = vpop.f32.mrb[6].mxu0 }
 0x139   :  { %v558_v44 = vpop.f32.mrb[7].mxu0 }
 0x13a   :  { %v239_v45 = vmul.f32 0.95, %v234_v41  ;;  %vm235_vm1 = vcmp.gt.f32.partialorder %v234_v41, 1.0  ;;  %v559_v46 = vadd.f32 %v558_v44, %v557_v43 }
 0x13b   :  { %629 = vmatmul.mubr.msk.f32.vlgmr.msra.gmra.mrb[0].mxu1 %vm235_vm1, %v790_v32  ;;  %v492_v49 = vsel %vm235_vm1, 1.0, %v791_v39 }
 0x13c   :  { %v240_v47 = vadd.f32 %v239_v45, %v195_v42  ;;  %v560_v48 = vpop.f32.mrb[8].mxu0  ;;  %v200_v52 = vadd.f32 %v559_v46, %v872_v26 }
 0x13d   :  { %v561_v50 = vpop.f32.mrb[9].mxu0 }
 0x13e   :  { %v241_v51 = vsub.f32 %v240_v47, %v492_v49  ;;  %v562_v53 = vadd.f32 %v561_v50, %v560_v48 }
 0x140   :  { %v246_v54 = vmul.f32 0.95, %v241_v51  ;;  %vm242_vm2 = vcmp.gt.f32.partialorder %v241_v51, 1.0  ;;  %v563_v55 = vpop.f32.mrb[10].mxu0  ;;  %v205_v61 = vadd.f32 %v562_v53, %v872_v26 }
 0x141   :  { %631 = vmatprep.mubr.msk.f32.mxu1 %vm242_vm2, %v790_v32  ;;  %v564_v56 = vpop.f32.mrb[11].mxu0  ;;  %v493_v59 = vsel %vm242_vm2, 1.0, %v791_v39 }
 0x142   :  { %v247_v57 = vadd.f32 %v246_v54, %v200_v52  ;;  %v565_v58 = vadd.f32 %v564_v56, %v563_v55 }
 0x144   :  { %v248_v60 = vsub.f32 %v247_v57, %v493_v59  ;;  %v566_v62 = vpop.f32.mrb[12].mxu0  ;;  %v210_v7 = vadd.f32 %v565_v58, %v872_v26 }
 0x145   :  { %v567_v63 = vpop.f32.mrb[13].mxu0 }
 0x146   :  { %v253_v0 = vmul.f32 0.95, %v248_v60  ;;  %vm249_vm3 = vcmp.gt.f32.partialorder %v248_v60, 1.0  ;;  %v568_v1 = vadd.f32 %v567_v63, %v566_v62 }
 0x147   :  { %632 = vmatmul.mubr.msk.f32.gmra.mrb[2].mxu1 %vm249_vm3, %v790_v32  ;;  %v494_v4 = vsel %vm249_vm3, 1.0, %v791_v39 }
 0x148   :  { %v254_v2 = vadd.f32 %v253_v0, %v205_v61  ;;  %v569_v3 = vpop.f32.mrb[14].mxu0  ;;  %v215_v13 = vadd.f32 %v568_v1, %v872_v26 }
 0x149   :  { %v570_v5 = vpop.f32.mrb[15].mxu0 }
 0x14a   :  { %v255_v6 = vsub.f32 %v254_v2, %v494_v4  ;;  %v571_v8 = vadd.f32 %v570_v5, %v569_v3 }
 0x14c   :  { %v260_v9 = vmul.f32 0.95, %v255_v6  ;;  %vm256_vm4 = vcmp.gt.f32.partialorder %v255_v6, 1.0  ;;  %v220_v18 = vadd.f32 %v571_v8, %v872_v26 }
 0x14d   :  { %634 = vmatprep.mubr.msk.f32.mxu1 %vm256_vm4, %v790_v32  ;;  %v495_v11 = vsel %vm256_vm4, 1.0, %v791_v39 }
 0x14e   :  { %v261_v10 = vadd.f32 %v260_v9, %v210_v7 }
 0x150   :  { %v262_v12 = vsub.f32 %v261_v10, %v495_v11 }
 0x152   :  { %v267_v14 = vmul.f32 0.95, %v262_v12  ;;  %vm263_vm5 = vcmp.gt.f32.partialorder %v262_v12, 1.0 }
 0x153   :  { %635 = vmatmul.mubr.msk.f32.gmra.mrb[4].mxu1 %vm263_vm5, %v790_v32  ;;  %v496_v16 = vsel %vm263_vm5, 1.0, %v791_v39 }
 0x154   :  { %v268_v15 = vadd.f32 %v267_v14, %v215_v13 }
 0x156   :  { %v269_v17 = vsub.f32 %v268_v15, %v496_v16 }
 0x158   :  { %v274_v19 = vmul.f32 0.95, %v269_v17  ;;  %vm270_vm6 = vcmp.gt.f32.partialorder %v269_v17, 1.0 }
 0x159   :  { %637 = vmatprep.mubr.msk.f32.mxu1 %vm270_vm6, %v790_v32  ;;  %v497_v21 = vsel %vm270_vm6, 1.0, %v791_v39 }
 0x15a   :  { %v275_v20 = vadd.f32 %v274_v19, %v220_v18 }
 0x15c   :  { %v276_v22 = vsub.f32 %v275_v20, %v497_v21 }
 0x15e   :  { %vm277_vm7 = vcmp.gt.f32.partialorder %v276_v22, 1.0 }
 0x15f   :  { %638 = vmatmul.mubr.msk.f32.gmra.mrb[6].mxu1 %vm277_vm7, %v790_v32 }
 0x20e   :  { %v630_v24 = vpop.f32.mrb[0].mxu1 }
 0x20f   :  { %v378_v25 = vpop.f32.mrb[1].mxu1  ;;  %v384_v28 = vadd.f32 %v630_v24, %v499_v23 }
 0x210   :  { %v379_v27 = vadd.f32 %v499_v23, %v378_v25 }
 0x212   :  { %vm419_vm8 = vcmp.gt.f32.partialorder %v379_v27, 1.0  ;;  %423 = vst [vmem:[%s962_s6] sm:$0xff] %v379_v27  ;;  %v424_v26 = vmul.f32 0.95, %v379_v27 }
 0x213   :  { %v500_v29 = vsel %vm419_vm8, 1.0, %v791_v39 }
 0x214   :  { %422 = vst [vmem:[%s961_s5] sm:$0xff] %v500_v29  ;;  %v425_v30 = vadd.f32 %v424_v26, %v384_v28 }
 0x216   :  { %v426_v31 = vsub.f32 %v425_v30, %v500_v29 }
 0x218   :  { %431 = vst [vmem:[%s962_s6 + $0x8] sm:$0xff] %v426_v31  ;;  %vm427_vm9 = vcmp.gt.f32.partialorder %v426_v31, 1.0  ;;  %v432_v36 = vmul.f32 0.95, %v426_v31 }
 0x219   :  { %v501_v32 = vsel %vm427_vm9, 1.0, %v791_v39 }
 0x21a   :  { %v633_v33 = vpop.f32.mrb[2].mxu1  ;;  %430 = vst [vmem:[%s961_s5 + $0x8] sm:$0xff] %v501_v32 }
 0x21b   :  { %v388_v34 = vpop.f32.mrb[3].mxu1  ;;  %v394_v40 = vadd.f32 %v633_v33, %v499_v23 }
 0x21c   :  { %v389_v35 = vadd.f32 %v499_v23, %v388_v34 }
 0x21e   :  { %v433_v37 = vadd.f32 %v432_v36, %v389_v35 }
 0x220   :  { %v434_v38 = vsub.f32 %v433_v37, %v501_v32 }
 0x222   :  { %vm435_vm10 = vcmp.gt.f32.partialorder %v434_v38, 1.0  ;;  %439 = vst [vmem:[%s962_s6 + $0x10] sm:$0xff] %v434_v38  ;;  %v440_v41 = vmul.f32 0.95, %v434_v38 }
 0x223   :  { %v502_v42 = vsel %vm435_vm10, 1.0, %v791_v39 }
 0x224   :  { %438 = vst [vmem:[%s961_s5 + $0x10] sm:$0xff] %v502_v42  ;;  %v441_v43 = vadd.f32 %v440_v41, %v394_v40 }
 0x226   :  { %v636_v44 = vpop.f32.mrb[4].mxu1  ;;  %v442_v45 = vsub.f32 %v441_v43, %v502_v42 }
 0x227   :  { %v398_v46 = vpop.f32.mrb[5].mxu1  ;;  %v404_v52 = vadd.f32 %v636_v44, %v499_v23 }
 0x228   :  { %v399_v47 = vadd.f32 %v499_v23, %v398_v46  ;;  %vm443_vm11 = vcmp.gt.f32.partialorder %v442_v45, 1.0  ;;  %447 = vst [vmem:[%s962_s6 + $0x18] sm:$0xff] %v442_v45  ;;  %v448_v48 = vmul.f32 0.95, %v442_v45 }
 0x229   :  { %v503_v49 = vsel %vm443_vm11, 1.0, %v791_v39 }
 0x22a   :  { %446 = vst [vmem:[%s961_s5 + $0x18] sm:$0xff] %v503_v49  ;;  %v449_v50 = vadd.f32 %v448_v48, %v399_v47 }
 0x22c   :  { %v450_v51 = vsub.f32 %v449_v50, %v503_v49 }
 0x22e   :  { %vm451_vm12 = vcmp.gt.f32.partialorder %v450_v51, 1.0  ;;  %455 = vst [vmem:[%s962_s6 + $0x20] sm:$0xff] %v450_v51  ;;  %v456_v53 = vmul.f32 0.95, %v450_v51 }
 0x22f   :  { %v504_v54 = vsel %vm451_vm12, 1.0, %v791_v39 }
 0x230   :  { %454 = vst [vmem:[%s961_s5 + $0x20] sm:$0xff] %v504_v54  ;;  %v457_v55 = vadd.f32 %v456_v53, %v404_v52 }
 0x232   :  { %v639_v56 = vpop.f32.mrb[6].mxu1  ;;  %v458_v57 = vsub.f32 %v457_v55, %v504_v54 }
 0x233   :  { %v408_v58 = vpop.f32.mrb[7].mxu1  ;;  %v414_v0 = vadd.f32 %v639_v56, %v499_v23 }
 0x234   :  { %v409_v59 = vadd.f32 %v499_v23, %v408_v58  ;;  %vm459_vm13 = vcmp.gt.f32.partialorder %v458_v57, 1.0  ;;  %463 = vst [vmem:[%s962_s6 + $0x28] sm:$0xff] %v458_v57  ;;  %v464_v60 = vmul.f32 0.95, %v458_v57 }
 0x235   :  { %v505_v61 = vsel %vm459_vm13, 1.0, %v791_v39 }
 0x236   :  { %462 = vst [vmem:[%s961_s5 + $0x28] sm:$0xff] %v505_v61  ;;  %v465_v62 = vadd.f32 %v464_v60, %v409_v59 }
 0x238   :  { %v466_v63 = vsub.f32 %v465_v62, %v505_v61 }
 0x23a   :  { %vm467_vm14 = vcmp.gt.f32.partialorder %v466_v63, 1.0  ;;  %471 = vst [vmem:[%s962_s6 + $0x30] sm:$0xff] %v466_v63  ;;  %v472_v1 = vmul.f32 0.95, %v466_v63 }
 0x23b   :  { %v506_v2 = vsel %vm467_vm14, 1.0, %v791_v39 }
 0x23c   :  { %470 = vst [vmem:[%s961_s5 + $0x30] sm:$0xff] %v506_v2  ;;  %v473_v3 = vadd.f32 %v472_v1, %v414_v0 }
 0x23e   :  { %v474_v4 = vsub.f32 %v473_v3, %v506_v2 }
 0x240   :  { %vm475_vm15 = vcmp.gt.f32.partialorder %v474_v4, 1.0  ;;  %479 = vst [vmem:[%s962_s6 + $0x38] sm:$0xff] %v474_v4 }
 0x241   :  { %v507_v5 = vsel %vm475_vm15, 1.0, %v791_v39 }
 0x242   :  { %478 = vst [vmem:[%s961_s5 + $0x38] sm:$0xff] %v507_v5 }
 0x243   :  { %488 = vsyncpa [#allocation4], 1 }
 0x244   :  { %489 = vsyncpa [#allocation6], 1 }

</bundles_post_ra>
